<compile_context>
chip_gen: v6e
topology: v6e:2x2x1
jax: 0.10.0
libtpu: 0.0.40
codegen_flags: <defaults>
</compile_context>

<pallas_src>
import math

import jax
import jax.numpy as jnp
from jax import lax
from jax.experimental import pallas as pl
from jax.experimental.pallas import tpu as pltpu

F32 = jnp.float32

IN_DIM = 128          # dim of x (go is Linear(256,256) and h_time is 128 wide)
TIME_DIM = 128        # TimestepEmbedding dim
HALF = TIME_DIM // 2  # 64
GO_DIM = 256
MLP_DIMS = (256, 128, 64, 16, 8, 1)


def _vmem_spec():
    return pl.BlockSpec(memory_space=pltpu.MemorySpace.VMEM)


# --------------------------- fused forward kernel ----------------------------
def _fused_kernel(x_ref, t_ref,
                  wt1c_ref, wt1s_ref, bt1_ref, wt2_ref, bt2_ref,
                  wgox_ref, wgoh_ref, bgo_ref,
                  wm1_ref, bm1_ref, wm2_ref, bm2_ref,
                  wm3_ref, bm3_ref, wm4_ref, bm4_ref,
                  wm5_ref, bm5_ref,
                  o_ref):
    silu = jax.nn.silu

    # ---- TimestepEmbedding(timesteps, 128) ----
    t = t_ref[...]                                                  # (bs, 1)
    k = lax.broadcasted_iota(jnp.int32, (1, HALF), 1).astype(F32)   # (1, 64)
    freqs = jnp.exp(k * (-math.log(10000.0) / HALF))                # (1, 64)
    args = t * freqs                                                # (bs, 64)
    cos_e = jnp.cos(args)
    sin_e = jnp.sin(args)

    # ---- time_embed: Linear(128,256) -> SiLU -> Linear(256,128) ----
    # cat(cos, sin) @ W1  ==  cos @ W1[:64] + sin @ W1[64:]   (no lane concat)
    h = (jnp.dot(cos_e, wt1c_ref[...], preferred_element_type=F32)
         + jnp.dot(sin_e, wt1s_ref[...], preferred_element_type=F32)
         + bt1_ref[...])
    h = silu(h)
    h_time = jnp.dot(h, wt2_ref[...], preferred_element_type=F32) + bt2_ref[...]

    # ---- go(cat(x, h_time))  ==  x @ Wgo[:128] + h_time @ Wgo[128:] + b ----
    g = (jnp.dot(x_ref[...], wgox_ref[...], preferred_element_type=F32)
         + jnp.dot(h_time, wgoh_ref[...], preferred_element_type=F32)
         + bgo_ref[...])

    # ---- mlp: ReLU -> 256->128 -> SiLU -> 128->64 -> SiLU -> 64->16 -> SiLU
    #           -> 16->8 -> SiLU -> 8->1 ----
    y = jnp.maximum(g, 0.0)
    y = silu(jnp.dot(y, wm1_ref[...], preferred_element_type=F32) + bm1_ref[...])
    y = silu(jnp.dot(y, wm2_ref[...], preferred_element_type=F32) + bm2_ref[...])
    y = silu(jnp.dot(y, wm3_ref[...], preferred_element_type=F32) + bm3_ref[...])
    y = silu(jnp.dot(y, wm4_ref[...], preferred_element_type=F32) + bm4_ref[...])
    # final Linear(8, 1): multiply-reduce on the VPU/XLU (w stored as (1, 8))
    # instead of an N=1 MXU matmul.
    y = jnp.sum(y * wm5_ref[...], axis=-1, keepdims=True) + bm5_ref[...]

    o_ref[...] = y


# --------------------------- python wrapper -----------------------------------
def simple_reg_net_newt_forward(params, x, timesteps):
    bs = x.shape[0]
    t2 = timesteps.reshape(bs, 1).astype(F32)

    wt1, bt1, wt2, bt2 = params["time_embed"]
    wgo, bgo = params["go"]
    (wm1, bm1), (wm2, bm2), (wm3, bm3), (wm4, bm4), (wm5, bm5) = params["mlp"]

    args = (x.astype(F32), t2,
            wt1[:HALF], wt1[HALF:], bt1, wt2, bt2,
            wgo[:IN_DIM], wgo[IN_DIM:], bgo,
            wm1, bm1, wm2, bm2, wm3, bm3, wm4, bm4,
            wm5, bm5)

    # advisory cost estimate (helps XLA schedule around the fused call)
    flops = 2 * bs * (HALF * GO_DIM * 2 + GO_DIM * TIME_DIM
                      + IN_DIM * GO_DIM + TIME_DIM * GO_DIM
                      + 256 * 128 + 128 * 64 + 64 * 16 + 16 * 8 + 8)
    transcendentals = HALF + bs * (2 * HALF + 256 + 128 + 128 + 64 + 16 + 8)
    bytes_accessed = 4 * (sum(int(a.size) for a in args) + bs)

    out = pl.pallas_call(
        _fused_kernel,
        out_shape=jax.ShapeDtypeStruct((bs, 1), F32),
        in_specs=[_vmem_spec() for _ in range(len(args))],
        out_specs=_vmem_spec(),
        cost_estimate=pl.CostEstimate(flops=flops,
                                      transcendentals=transcendentals,
                                      bytes_accessed=bytes_accessed),
    )(*args)
    return out


# --------------------------- pure-JAX reference (for self-check) --------------
def _reference_forward(params, x, timesteps):
    wt1, bt1, wt2, bt2 = params["time_embed"]
    wgo, bgo = params["go"]
    (wm1, bm1), (wm2, bm2), (wm3, bm3), (wm4, bm4), (wm5, bm5) = params["mlp"]
    hp = lax.Precision.HIGHEST

    freqs = jnp.exp(-math.log(10000.0)
                    * jnp.arange(HALF, dtype=F32) / HALF)
    a = timesteps.astype(F32)[:, None] * freqs[None, :]
    temb = jnp.concatenate([jnp.cos(a), jnp.sin(a)], axis=-1)         # (bs, 128)
    h = jax.nn.silu(jnp.dot(temb, wt1, precision=hp) + bt1)
    h_time = jnp.dot(h, wt2, precision=hp) + bt2
    g = jnp.dot(jnp.concatenate([x.astype(F32), h_time], axis=1), wgo,
                precision=hp) + bgo
    y = jnp.maximum(g, 0.0)
    y = jax.nn.silu(jnp.dot(y, wm1, precision=hp) + bm1)
    y = jax.nn.silu(jnp.dot(y, wm2, precision=hp) + bm2)
    y = jax.nn.silu(jnp.dot(y, wm3, precision=hp) + bm3)
    y = jax.nn.silu(jnp.dot(y, wm4, precision=hp) + bm4)
    return jnp.sum(y * wm5, axis=-1, keepdims=True) + bm5


# --------------------------- deterministic parameter init ---------------------
def init_params(key):
    keys = iter(jax.random.split(key, 32))

    def lin(fan_in, fan_out):
        # PyTorch nn.Linear default: U(-1/sqrt(fan_in), 1/sqrt(fan_in)),
        # weight stored pre-transposed as [in, out].
        bound = 1.0 / math.sqrt(fan_in)
        w = jax.random.uniform(next(keys), (fan_in, fan_out), F32, -bound, bound)
        b = jax.random.uniform(next(keys), (1, fan_out), F32, -bound, bound)
        return w, b

    params = {}
    wt1, bt1 = lin(TIME_DIM, GO_DIM)          # time_embed[0]: Linear(128, 256)
    wt2, bt2 = lin(GO_DIM, TIME_DIM)          # time_embed[2]: Linear(256, 128)
    params["time_embed"] = (wt1, bt1, wt2, bt2)
    params["go"] = lin(GO_DIM, GO_DIM)        # go: Linear(256, 256)
    mlp = [lin(256, 128), lin(128, 64), lin(64, 16), lin(16, 8)]
    w5, b5 = lin(8, 1)                        # Linear(8, 1)
    mlp.append((w5.reshape(1, 8), b5))        # store final weight as (1, 8)
    params["mlp"] = mlp
    return params


# --------------------------- main ----------------------------------------------
if __name__ == "__main__":
    key = jax.random.PRNGKey(0)
    pkey, xkey, tkey = jax.random.split(key, 3)
    params = init_params(pkey)

    bs = 4
    x = jax.random.normal(xkey, (bs, IN_DIM), F32)                       # latent input
    timesteps = jax.random.randint(tkey, (bs,), 0, 1000).astype(F32)     # diffusion steps

    out = simple_reg_net_newt_forward(params, x, timesteps)
    jax.block_until_ready(out)

    assert out.shape == (bs, 1) and out.dtype == F32
    ref = _reference_forward(params, x, timesteps)
    assert jnp.allclose(out, ref, rtol=1e-2, atol=1e-2), (out, ref)
    print("KERNEL_OK")
</pallas_src>

<mosaic_0001>
module attributes {stable_mosaic.version = 11 : i64} {
  func.func @_fused_kernel(%arg0: memref<4x128xf32, #tpu.memory_space<vmem>>, %arg1: memref<4x1xf32, #tpu.memory_space<vmem>>, %arg2: memref<64x256xf32, #tpu.memory_space<vmem>>, %arg3: memref<64x256xf32, #tpu.memory_space<vmem>>, %arg4: memref<1x256xf32, #tpu.memory_space<vmem>>, %arg5: memref<256x128xf32, #tpu.memory_space<vmem>>, %arg6: memref<1x128xf32, #tpu.memory_space<vmem>>, %arg7: memref<128x256xf32, #tpu.memory_space<vmem>>, %arg8: memref<128x256xf32, #tpu.memory_space<vmem>>, %arg9: memref<1x256xf32, #tpu.memory_space<vmem>>, %arg10: memref<256x128xf32, #tpu.memory_space<vmem>>, %arg11: memref<1x128xf32, #tpu.memory_space<vmem>>, %arg12: memref<128x64xf32, #tpu.memory_space<vmem>>, %arg13: memref<1x64xf32, #tpu.memory_space<vmem>>, %arg14: memref<64x16xf32, #tpu.memory_space<vmem>>, %arg15: memref<1x16xf32, #tpu.memory_space<vmem>>, %arg16: memref<16x8xf32, #tpu.memory_space<vmem>>, %arg17: memref<1x8xf32, #tpu.memory_space<vmem>>, %arg18: memref<1x8xf32, #tpu.memory_space<vmem>>, %arg19: memref<1x1xf32, #tpu.memory_space<vmem>>, %arg20: memref<4x1xf32, #tpu.memory_space<vmem>>) attributes {dimension_semantics = [], scalar_prefetch = 0 : i64, scratch_operands = 0 : i64, tpu.core_type = #tpu.core_type<tc>} {
    %c0 = arith.constant 0 : index
    %c0_0 = arith.constant 0 : index
    %0 = vector.load %arg1[%c0, %c0_0] : memref<4x1xf32, #tpu.memory_space<vmem>>, vector<4x1xf32>
    %1 = tpu.iota {dimensions = array<i32: 1>} : vector<1x64xi32>
    %2 = arith.sitofp %1 : vector<1x64xi32> to vector<1x64xf32>
    %cst = arith.constant -0.14391157 : f32
    %3 = vector.broadcast %cst : f32 to vector<1x64xf32>
    %4 = arith.mulf %2, %3 : vector<1x64xf32>
    %5 = math.exp %4 : vector<1x64xf32>
    %6 = vector.broadcast %0 : vector<4x1xf32> to vector<4x64xf32>
    %7 = vector.broadcast %5 : vector<1x64xf32> to vector<4x64xf32>
    %8 = arith.mulf %6, %7 : vector<4x64xf32>
    %9 = math.cos %8 : vector<4x64xf32>
    %10 = math.sin %8 : vector<4x64xf32>
    %c0_1 = arith.constant 0 : index
    %c0_2 = arith.constant 0 : index
    %11 = vector.load %arg2[%c0_1, %c0_2] : memref<64x256xf32, #tpu.memory_space<vmem>>, vector<64x256xf32>
    %cst_3 = arith.constant dense<0.000000e+00> : vector<4x256xf32>
    %12 = tpu.matmul %9, %11, %cst_3 {dimension_numbers = #tpu.dot_dimension_numbers<[1], [0], [0], [1], [0, 0, 1, 1], [], []>} : vector<4x64xf32>, vector<64x256xf32>, vector<4x256xf32> -> vector<4x256xf32>
    %c0_4 = arith.constant 0 : index
    %c0_5 = arith.constant 0 : index
    %13 = vector.load %arg3[%c0_4, %c0_5] : memref<64x256xf32, #tpu.memory_space<vmem>>, vector<64x256xf32>
    %cst_6 = arith.constant dense<0.000000e+00> : vector<4x256xf32>
    %14 = tpu.matmul %10, %13, %cst_6 {dimension_numbers = #tpu.dot_dimension_numbers<[1], [0], [0], [1], [0, 0, 1, 1], [], []>} : vector<4x64xf32>, vector<64x256xf32>, vector<4x256xf32> -> vector<4x256xf32>
    %15 = arith.addf %12, %14 : vector<4x256xf32>
    %c0_7 = arith.constant 0 : index
    %c0_8 = arith.constant 0 : index
    %16 = vector.load %arg4[%c0_7, %c0_8] : memref<1x256xf32, #tpu.memory_space<vmem>>, vector<1x256xf32>
    %17 = vector.broadcast %16 : vector<1x256xf32> to vector<4x256xf32>
    %18 = arith.addf %15, %17 : vector<4x256xf32>
    %19 = arith.negf %18 : vector<4x256xf32>
    %20 = math.exp %19 : vector<4x256xf32>
    %cst_9 = arith.constant 1.000000e+00 : f32
    %21 = vector.broadcast %cst_9 : f32 to vector<4x256xf32>
    %22 = arith.addf %21, %20 : vector<4x256xf32>
    %23 = arith.divf %21, %22 : vector<4x256xf32>
    %24 = arith.mulf %18, %23 : vector<4x256xf32>
    %c0_10 = arith.constant 0 : index
    %c0_11 = arith.constant 0 : index
    %25 = vector.load %arg5[%c0_10, %c0_11] : memref<256x128xf32, #tpu.memory_space<vmem>>, vector<256x128xf32>
    %cst_12 = arith.constant dense<0.000000e+00> : vector<4x128xf32>
    %26 = tpu.matmul %24, %25, %cst_12 {dimension_numbers = #tpu.dot_dimension_numbers<[1], [0], [0], [1], [0, 0, 1, 1], [], []>} : vector<4x256xf32>, vector<256x128xf32>, vector<4x128xf32> -> vector<4x128xf32>
    %c0_13 = arith.constant 0 : index
    %c0_14 = arith.constant 0 : index
    %27 = vector.load %arg6[%c0_13, %c0_14] : memref<1x128xf32, #tpu.memory_space<vmem>>, vector<1x128xf32>
    %28 = vector.broadcast %27 : vector<1x128xf32> to vector<4x128xf32>
    %29 = arith.addf %26, %28 : vector<4x128xf32>
    %c0_15 = arith.constant 0 : index
    %c0_16 = arith.constant 0 : index
    %30 = vector.load %arg0[%c0_15, %c0_16] : memref<4x128xf32, #tpu.memory_space<vmem>>, vector<4x128xf32>
    %c0_17 = arith.constant 0 : index
    %c0_18 = arith.constant 0 : index
    %31 = vector.load %arg7[%c0_17, %c0_18] : memref<128x256xf32, #tpu.memory_space<vmem>>, vector<128x256xf32>
    %cst_19 = arith.constant dense<0.000000e+00> : vector<4x256xf32>
    %32 = tpu.matmul %30, %31, %cst_19 {dimension_numbers = #tpu.dot_dimension_numbers<[1], [0], [0], [1], [0, 0, 1, 1], [], []>} : vector<4x128xf32>, vector<128x256xf32>, vector<4x256xf32> -> vector<4x256xf32>
    %c0_20 = arith.constant 0 : index
    %c0_21 = arith.constant 0 : index
    %33 = vector.load %arg8[%c0_20, %c0_21] : memref<128x256xf32, #tpu.memory_space<vmem>>, vector<128x256xf32>
    %cst_22 = arith.constant dense<0.000000e+00> : vector<4x256xf32>
    %34 = tpu.matmul %29, %33, %cst_22 {dimension_numbers = #tpu.dot_dimension_numbers<[1], [0], [0], [1], [0, 0, 1, 1], [], []>} : vector<4x128xf32>, vector<128x256xf32>, vector<4x256xf32> -> vector<4x256xf32>
    %35 = arith.addf %32, %34 : vector<4x256xf32>
    %c0_23 = arith.constant 0 : index
    %c0_24 = arith.constant 0 : index
    %36 = vector.load %arg9[%c0_23, %c0_24] : memref<1x256xf32, #tpu.memory_space<vmem>>, vector<1x256xf32>
    %37 = vector.broadcast %36 : vector<1x256xf32> to vector<4x256xf32>
    %38 = arith.addf %35, %37 : vector<4x256xf32>
    %cst_25 = arith.constant 0.000000e+00 : f32
    %39 = vector.broadcast %cst_25 : f32 to vector<4x256xf32>
    %40 = arith.maximumf %38, %39 : vector<4x256xf32>
    %c0_26 = arith.constant 0 : index
    %c0_27 = arith.constant 0 : index
    %41 = vector.load %arg10[%c0_26, %c0_27] : memref<256x128xf32, #tpu.memory_space<vmem>>, vector<256x128xf32>
    %cst_28 = arith.constant dense<0.000000e+00> : vector<4x128xf32>
    %42 = tpu.matmul %40, %41, %cst_28 {dimension_numbers = #tpu.dot_dimension_numbers<[1], [0], [0], [1], [0, 0, 1, 1], [], []>} : vector<4x256xf32>, vector<256x128xf32>, vector<4x128xf32> -> vector<4x128xf32>
    %c0_29 = arith.constant 0 : index
    %c0_30 = arith.constant 0 : index
    %43 = vector.load %arg11[%c0_29, %c0_30] : memref<1x128xf32, #tpu.memory_space<vmem>>, vector<1x128xf32>
    %44 = vector.broadcast %43 : vector<1x128xf32> to vector<4x128xf32>
    %45 = arith.addf %42, %44 : vector<4x128xf32>
    %46 = arith.negf %45 : vector<4x128xf32>
    %47 = math.exp %46 : vector<4x128xf32>
    %cst_31 = arith.constant 1.000000e+00 : f32
    %48 = vector.broadcast %cst_31 : f32 to vector<4x128xf32>
    %49 = arith.addf %48, %47 : vector<4x128xf32>
    %50 = arith.divf %48, %49 : vector<4x128xf32>
    %51 = arith.mulf %45, %50 : vector<4x128xf32>
    %c0_32 = arith.constant 0 : index
    %c0_33 = arith.constant 0 : index
    %52 = vector.load %arg12[%c0_32, %c0_33] : memref<128x64xf32, #tpu.memory_space<vmem>>, vector<128x64xf32>
    %cst_34 = arith.constant dense<0.000000e+00> : vector<4x64xf32>
    %53 = tpu.matmul %51, %52, %cst_34 {dimension_numbers = #tpu.dot_dimension_numbers<[1], [0], [0], [1], [0, 0, 1, 1], [], []>} : vector<4x128xf32>, vector<128x64xf32>, vector<4x64xf32> -> vector<4x64xf32>
    %c0_35 = arith.constant 0 : index
    %c0_36 = arith.constant 0 : index
    %54 = vector.load %arg13[%c0_35, %c0_36] : memref<1x64xf32, #tpu.memory_space<vmem>>, vector<1x64xf32>
    %55 = vector.broadcast %54 : vector<1x64xf32> to vector<4x64xf32>
    %56 = arith.addf %53, %55 : vector<4x64xf32>
    %57 = arith.negf %56 : vector<4x64xf32>
    %58 = math.exp %57 : vector<4x64xf32>
    %cst_37 = arith.constant 1.000000e+00 : f32
    %59 = vector.broadcast %cst_37 : f32 to vector<4x64xf32>
    %60 = arith.addf %59, %58 : vector<4x64xf32>
    %61 = arith.divf %59, %60 : vector<4x64xf32>
    %62 = arith.mulf %56, %61 : vector<4x64xf32>
    %c0_38 = arith.constant 0 : index
    %c0_39 = arith.constant 0 : index
    %63 = vector.load %arg14[%c0_38, %c0_39] : memref<64x16xf32, #tpu.memory_space<vmem>>, vector<64x16xf32>
    %cst_40 = arith.constant dense<0.000000e+00> : vector<4x16xf32>
    %64 = tpu.matmul %62, %63, %cst_40 {dimension_numbers = #tpu.dot_dimension_numbers<[1], [0], [0], [1], [0, 0, 1, 1], [], []>} : vector<4x64xf32>, vector<64x16xf32>, vector<4x16xf32> -> vector<4x16xf32>
    %c0_41 = arith.constant 0 : index
    %c0_42 = arith.constant 0 : index
    %65 = vector.load %arg15[%c0_41, %c0_42] : memref<1x16xf32, #tpu.memory_space<vmem>>, vector<1x16xf32>
    %66 = vector.broadcast %65 : vector<1x16xf32> to vector<4x16xf32>
    %67 = arith.addf %64, %66 : vector<4x16xf32>
    %68 = arith.negf %67 : vector<4x16xf32>
    %69 = math.exp %68 : vector<4x16xf32>
    %cst_43 = arith.constant 1.000000e+00 : f32
    %70 = vector.broadcast %cst_43 : f32 to vector<4x16xf32>
    %71 = arith.addf %70, %69 : vector<4x16xf32>
    %72 = arith.divf %70, %71 : vector<4x16xf32>
    %73 = arith.mulf %67, %72 : vector<4x16xf32>
    %c0_44 = arith.constant 0 : index
    %c0_45 = arith.constant 0 : index
    %74 = vector.load %arg16[%c0_44, %c0_45] : memref<16x8xf32, #tpu.memory_space<vmem>>, vector<16x8xf32>
    %cst_46 = arith.constant dense<0.000000e+00> : vector<4x8xf32>
    %75 = tpu.matmul %73, %74, %cst_46 {dimension_numbers = #tpu.dot_dimension_numbers<[1], [0], [0], [1], [0, 0, 1, 1], [], []>} : vector<4x16xf32>, vector<16x8xf32>, vector<4x8xf32> -> vector<4x8xf32>
    %c0_47 = arith.constant 0 : index
    %c0_48 = arith.constant 0 : index
    %76 = vector.load %arg17[%c0_47, %c0_48] : memref<1x8xf32, #tpu.memory_space<vmem>>, vector<1x8xf32>
    %77 = vector.broadcast %76 : vector<1x8xf32> to vector<4x8xf32>
    %78 = arith.addf %75, %77 : vector<4x8xf32>
    %79 = arith.negf %78 : vector<4x8xf32>
    %80 = math.exp %79 : vector<4x8xf32>
    %cst_49 = arith.constant 1.000000e+00 : f32
    %81 = vector.broadcast %cst_49 : f32 to vector<4x8xf32>
    %82 = arith.addf %81, %80 : vector<4x8xf32>
    %83 = arith.divf %81, %82 : vector<4x8xf32>
    %84 = arith.mulf %78, %83 : vector<4x8xf32>
    %c0_50 = arith.constant 0 : index
    %c0_51 = arith.constant 0 : index
    %85 = vector.load %arg18[%c0_50, %c0_51] : memref<1x8xf32, #tpu.memory_space<vmem>>, vector<1x8xf32>
    %86 = vector.broadcast %85 : vector<1x8xf32> to vector<4x8xf32>
    %87 = arith.mulf %84, %86 : vector<4x8xf32>
    %cst_52 = arith.constant dense<0.000000e+00> : vector<4xf32>
    %88 = vector.multi_reduction <add>, %87, %cst_52 [1] : vector<4x8xf32> to vector<4xf32>
    %89 = vector.shape_cast %88 : vector<4xf32> to vector<4x1xf32>
    %c0_53 = arith.constant 0 : index
    %c0_54 = arith.constant 0 : index
    %90 = vector.load %arg19[%c0_53, %c0_54] : memref<1x1xf32, #tpu.memory_space<vmem>>, vector<1x1xf32>
    %91 = vector.broadcast %90 : vector<1x1xf32> to vector<4x1xf32>
    %92 = arith.addf %89, %91 : vector<4x1xf32>
    %c0_55 = arith.constant 0 : index
    %c0_56 = arith.constant 0 : index
    %93 = vector.load %arg20[%c0_55, %c0_56] : memref<4x1xf32, #tpu.memory_space<vmem>>, vector<4x1xf32>
    tpu.vector_store %arg20[%c0_55, %c0_56], %92 {strides = array<i32>} : memref<4x1xf32, #tpu.memory_space<vmem>>, vector<4x1xf32>,
    return
  }
}

</mosaic_0001>

<bundles_post_ra>
// kernel: tpu_custom_call.1
= control target key start
LH: loop header
LB: loop body
LE: loop exit
PB: predicated region body
PF: predicated region fallthrough
CT: control target
= control target key end

     0   :  { %s2314_s0 = inlined_call_operand.hbm [shape: f32[4,128], index: 0, kind: input, shape index: {}]   ;;  %s2315_s1 = inlined_call_operand.vmem [shape: f32[4,1], index: 1, kind: input, shape index: {}]   ;;  %s2316_s2 = inlined_call_operand.hbm [shape: f32[64,256], index: 2, kind: input, shape index: {}]   ;;  %s2317_s3 = inlined_call_operand.hbm [shape: f32[64,256], index: 3, kind: input, shape index: {}]   ;;  %s2318_s4 = inlined_call_operand.hbm [shape: f32[1,256], index: 4, kind: input, shape index: {}]   ;;  %s2319_s5 = inlined_call_operand.vmem [shape: f32[256,128], index: 5, kind: input, shape index: {}]   ;;  %s2320_s6 = inlined_call_operand.hbm [shape: f32[1,128], index: 6, kind: input, shape index: {}]   ;;  %s2321_s7 = inlined_call_operand.hbm [shape: f32[128,256], index: 7, kind: input, shape index: {}]   ;;  %s2322_s8 = inlined_call_operand.hbm [shape: f32[128,256], index: 8, kind: input, shape index: {}]   ;;  %s2323_s9 = inlined_call_operand.hbm [shape: f32[1,256], index: 9, kind: input, shape index: {}]   ;;  %s2324_s10 = inlined_call_operand.hbm [shape: f32[256,128], index: 10, kind: input, shape index: {}]   ;;  %s2325_s11 = inlined_call_operand.hbm [shape: f32[1,128], index: 11, kind: input, shape index: {}]   ;;  %s2326_s12 = inlined_call_operand.vmem [shape: f32[128,64], index: 12, kind: input, shape index: {}]   ;;  %s2327_s13 = inlined_call_operand.hbm [shape: f32[1,64], index: 13, kind: input, shape index: {}]   ;;  %s2328_s14 = inlined_call_operand.vmem [shape: f32[64,16], index: 14, kind: input, shape index: {}]   ;;  %s2329_s15 = inlined_call_operand.vmem [shape: f32[1,16], index: 15, kind: input, shape index: {}]   ;;  %s2330_s16 = inlined_call_operand.vmem [shape: f32[16,8], index: 16, kind: input, shape index: {}]   ;;  %s2331_s17 = inlined_call_operand.vmem [shape: f32[1,8], index: 17, kind: input, shape index: {}]   ;;  %s2332_s18 = inlined_call_operand.vmem [shape: f32[1,8], index: 18, kind: input, shape index: {}]   ;;  %s2333_s19 = inlined_call_operand.<no memory space> [shape: f32[1,1], index: 19, kind: input, shape index: {}]   ;;  %s2334_s20 = inlined_call_operand.vmem [shape: f32[4,1], index: 20, kind: output, shape index: {}]  }
   0x1   :  { %2335 = sst [smem:[#allocation26_spill]] %s2314_s0  ;;  %v25_v0 = vstv %s2333_s19 }
   0x2   :  { %2336 = sst [smem:[#allocation27_spill]] %s2315_s1  ;;  %26 = vst [vmem:[#allocation2] sm:$0x1] %v25_v0 }
   0x3   :  { %2337 = sst [smem:[#allocation28_spill]] %s2316_s2 }
   0x4   :  { %2338 = sst [smem:[#allocation29_spill]] %s2317_s3 }
   0x5   :  { %2339 = sst [smem:[#allocation30_spill]] %s2318_s4 }
   0x6   :  { %27 = vsyncpa [#allocation4], 0 }
   0x7   :  { %28 = vsyncpa [#allocation6], 0 }
   0x8   :  { %29 = vsyncpa [#allocation9], 0 }
   0x9   :  { %30 = vsyncpa [#allocation12], 0 }
   0xa   :  { %31 = vsyncpa [#allocation15], 0 }
   0xb   :  { %32 = vsyncpa [#allocation18], 0  ;;  %s1874_s23 = smov [#allocation5]  }
   0xc   :  { %s50_s24 = sshll.u32 %s1874_s23, 4  ;;  %s51_s24 = int_to_ptr.vmem [resolvable:$true] %s50_s24 }
   0xd   :  { %s1650_s2 = scalar_lea.vmem %s51_s24, 2048  ;;  %p1655_p1 = scmp.lt.s32.totalorder %s51_s24, %s51_s24 }
   0xe   :  { %p1651_p0 = scmp.ne.s32.totalorder %s51_s24, %s1650_s2  ;;  %p1656_p2 = scmp.lt.s32.totalorder %s1650_s2, %s1650_s2 }
  0x10   :  { %p1657_p3 = por %p1656_p2, %p1655_p1 }
  0x12   :  { %p1658_p4 = pnand %p1657_p3, %p1651_p0 }
  0x14   :  { %1661 = shalt.err (!%p1658_p4)
}
  0x15   :  { %s1875_s25 = smov 256   ;;  %s1876_s3 = smov 16  }
  0x16   :  { %s2340_s27 = sld [smem:[#allocation28_spill]]  ;;  %s1877_s28 = smov [#allocation8]  }
  0x17   :  { %s75_s4 = sshll.u32 %s1877_s28, 4  ;;  %s1878_s29 = smov [#allocation11]   ;;  %s76_s4 = int_to_ptr.vmem [resolvable:$true] %s75_s4 }
  0x18   :  { %s96_s30 = sshll.u32 %s1878_s29, 4  ;;  %s1670_s0 = scalar_lea.vmem %s76_s4, 32  ;;  %s97_s30 = int_to_ptr.vmem [resolvable:$true] %s96_s30 }
  0x19   :  { %p1671_p5 = scmp.ne.s32.totalorder %s76_s4, %s1670_s0  ;;  %p1675_p6 = scmp.lt.s32.totalorder %s76_s4, %s76_s4 }
  0x1a   :  { %p1676_p7 = scmp.lt.s32.totalorder %s1670_s0, %s1670_s0 }
  0x1c   :  { %56 = dma.hbm_to_vmem [thread:$0]  %s2340_s27, 2048, %s51_s24, [#allocation6], %s1875_s25, %s1875_s25, %s1876_s3  }
  0x1d   :  { %p1677_p8 = por %p1676_p7, %p1675_p6 }
  0x1f   :  { %p1678_p9 = pnand %p1677_p8, %p1671_p5 }
  0x21   :  { %1681 = shalt.err (!%p1678_p9)
}
  0x22   :  { %s2341_s22 = sld [smem:[#allocation30_spill]]  ;;  %s1690_s23 = scalar_lea.vmem %s97_s30, 4096 }
  0x23   :  { %p1691_p10 = scmp.ne.s32.totalorder %s97_s30, %s1690_s23  ;;  %p1695_p11 = scmp.lt.s32.totalorder %s97_s30, %s97_s30 }
  0x24   :  { %p1696_p12 = scmp.lt.s32.totalorder %s1690_s23, %s1690_s23 }
  0x26   :  { %p1697_p13 = por %p1696_p12, %p1695_p11 }
  0x28   :  { %78 = dma.hbm_to_vmem [thread:$0]  %s2341_s22, 32, %s76_s4, [#allocation9]  }
  0x29   :  { %p1698_p0 = pnand %p1697_p13, %p1691_p10 }
  0x2b   :  { %1701 = shalt.err (!%p1698_p0)
}
  0x2c   :  { %102 = dma.hbm_to_vmem [thread:$0]  %s2321_s7, 4096, %s97_s30, [#allocation12], %s1875_s25, %s1875_s25, %s1876_s3  }
  0x2d   :  { %s1879_s19 = smov [#allocation14]   ;;  %s1880_s27 = smov [#allocation17]  }
  0x2e   :  { %s121_s26 = sshll.u32 %s1879_s19, 4  ;;  %s143_s28 = sshll.u32 %s1880_s27, 4  ;;  %s122_s26 = int_to_ptr.vmem [resolvable:$true] %s121_s26  ;;  %s144_s28 = int_to_ptr.vmem [resolvable:$true] %s143_s28 }
  0x2f   :  { %s1710_s4 = scalar_lea.vmem %s122_s26, 32  ;;  %p1715_p2 = scmp.lt.s32.totalorder %s122_s26, %s122_s26 }
  0x30   :  { %p1711_p1 = scmp.ne.s32.totalorder %s122_s26, %s1710_s4  ;;  %p1716_p3 = scmp.lt.s32.totalorder %s1710_s4, %s1710_s4 }
  0x32   :  { %p1717_p4 = por %p1716_p3, %p1715_p2 }
  0x34   :  { %p1718_p5 = pnand %p1717_p4, %p1711_p1 }
  0x36   :  { %1721 = shalt.err (!%p1718_p5)
}
  0x37   :  { %124 = dma.hbm_to_vmem [thread:$0]  %s2323_s9, 32, %s122_s26, [#allocation15]  }
  0x38   :  { %s1730_s21 = scalar_lea.vmem %s144_s28, 16  ;;  %s1734_s7 = scalar_lea.vmem %s144_s28, 32 }
  0x39   :  { %p1731_p6 = scmp.ne.s32.totalorder %s144_s28, %s1730_s21  ;;  %p1735_p7 = scmp.lt.s32.totalorder %s144_s28, %s144_s28 }
  0x3a   :  { %p1736_p8 = scmp.lt.s32.totalorder %s1734_s7, %s1730_s21 }
  0x3c   :  { %p1737_p9 = por %p1736_p8, %p1735_p7 }
  0x3e   :  { %p1738_p10 = pnand %p1737_p9, %p1731_p6 }
  0x40   :  { %1741 = shalt.err (!%p1738_p10)
}
  0x41   :  { %146 = dma.hbm_to_vmem [thread:$0]  %s2325_s11, 16, %s144_s28, [#allocation18]  }
  0x42   :  { %s1881_s22 = smov [#allocation3]   ;;  %s1882_s24 = smov [#allocation7]  }
  0x43   :  { %s39_s23 = sshll.u32 %s1881_s22, 4  ;;  %s62_s2 = sshll.u32 %s1882_s24, 4  ;;  %s40_s23 = int_to_ptr.vmem [resolvable:$true] %s39_s23  ;;  %s63_s2 = int_to_ptr.vmem [resolvable:$true] %s62_s2 }
  0x44   :  { %s1750_s19 = scalar_lea.vmem %s40_s23, 64  ;;  %p1755_p12 = scmp.lt.s32.totalorder %s40_s23, %s40_s23 }
  0x45   :  { %p1751_p11 = scmp.ne.s32.totalorder %s40_s23, %s1750_s19  ;;  %p1756_p13 = scmp.lt.s32.totalorder %s1750_s19, %s1750_s19 }
  0x47   :  { %p1757_p0 = por %p1756_p13, %p1755_p12 }
  0x49   :  { %p1758_p1 = pnand %p1757_p0, %p1751_p11 }
  0x4b   :  { %1761 = shalt.err (!%p1758_p1)
}
  0x4c   :  { %s2342_s27 = sld [smem:[#allocation26_spill]]  ;;  %s1770_s4 = scalar_lea.vmem %s63_s2, 2048 }
  0x4d   :  { %p1771_p2 = scmp.ne.s32.totalorder %s63_s2, %s1770_s4  ;;  %p1775_p3 = scmp.lt.s32.totalorder %s63_s2, %s63_s2 }
  0x4e   :  { %p1776_p4 = scmp.lt.s32.totalorder %s1770_s4, %s1770_s4 }
  0x50   :  { %p1777_p5 = por %p1776_p4, %p1775_p3 }
  0x52   :  { %42 = dma.hbm_to_vmem [thread:$0]  %s2342_s27, 64, %s40_s23, [#allocation4]  }
  0x53   :  { %p1778_p6 = pnand %p1777_p5, %p1771_p2 }
  0x55   :  { %1781 = shalt.err (!%p1778_p6)
}
  0x56   :  { %s2343_s29 = sld [smem:[#allocation29_spill]]  ;;  %s1883_s0 = smov [#allocation10]  }
  0x57   :  { %s87_s21 = sshll.u32 %s1883_s0, 4  ;;  %s1884_s7 = smov [#allocation13]   ;;  %s88_s21 = int_to_ptr.vmem [resolvable:$true] %s87_s21 }
  0x58   :  { %s108_s30 = sshll.u32 %s1884_s7, 4  ;;  %s1790_s1 = scalar_lea.vmem %s88_s21, 16  ;;  %s109_s30 = int_to_ptr.vmem [resolvable:$true] %s108_s30 }
  0x59   :  { %p1791_p7 = scmp.ne.s32.totalorder %s88_s21, %s1790_s1  ;;  %s1794_s22 = scalar_lea.vmem %s88_s21, 32 }
  0x5a   :  { %p1795_p8 = scmp.lt.s32.totalorder %s88_s21, %s88_s21  ;;  %p1796_p9 = scmp.lt.s32.totalorder %s1794_s22, %s1790_s1 }
  0x5c   :  { %68 = dma.hbm_to_vmem [thread:$0]  %s2343_s29, 2048, %s63_s2, [#allocation6], %s1875_s25, %s1875_s25, %s1876_s3  }
  0x5d   :  { %p1797_p10 = por %p1796_p9, %p1795_p8 }
  0x5f   :  { %p1798_p11 = pnand %p1797_p10, %p1791_p7 }
  0x61   :  { %1801 = shalt.err (!%p1798_p11)
}
  0x62   :  { %90 = dma.hbm_to_vmem [thread:$0]  %s2320_s6, 16, %s88_s21, [#allocation9]  }
  0x63   :  { %s1810_s19 = scalar_lea.vmem %s109_s30, 4096  ;;  %p1815_p13 = scmp.lt.s32.totalorder %s109_s30, %s109_s30 }
  0x64   :  { %p1811_p12 = scmp.ne.s32.totalorder %s109_s30, %s1810_s19  ;;  %p1816_p0 = scmp.lt.s32.totalorder %s1810_s19, %s1810_s19 }
  0x66   :  { %p1817_p1 = por %p1816_p0, %p1815_p13 }
  0x68   :  { %p1818_p2 = pnand %p1817_p1, %p1811_p12 }
  0x6a   :  { %1821 = shalt.err (!%p1818_p2)
}
  0x6b   :  { %114 = dma.hbm_to_vmem [thread:$0]  %s2322_s8, 4096, %s109_s30, [#allocation12], %s1875_s25, %s1875_s25, %s1876_s3  }
  0x6c   :  { %s1885_s26 = smov [#allocation16]  }
  0x6d   :  { %s130_s27 = sshll.u32 %s1885_s26, 4  ;;  %s131_s27 = int_to_ptr.vmem [resolvable:$true] %s130_s27 }
  0x6e   :  { %s1830_s4 = scalar_lea.vmem %s131_s27, 4096  ;;  %p1835_p4 = scmp.lt.s32.totalorder %s131_s27, %s131_s27 }
  0x6f   :  { %p1831_p3 = scmp.ne.s32.totalorder %s131_s27, %s1830_s4  ;;  %p1836_p5 = scmp.lt.s32.totalorder %s1830_s4, %s1830_s4 }
  0x71   :  { %p1837_p6 = por %p1836_p5, %p1835_p4 }
  0x73   :  { %p1838_p7 = pnand %p1837_p6, %p1831_p3 }
  0x75   :  { %1841 = shalt.err (!%p1838_p7)
}
  0x76   :  { %s1886_s6 = smov 128   ;;  %s1887_s11 = smov 8  }
  0x77   :  { %136 = dma.hbm_to_vmem [thread:$0]  %s2324_s10, 4096, %s131_s27, [#allocation15], %s1886_s6, %s1886_s6, %s1887_s11  }
  0x78   :  { %s1888_s0 = smov [#allocation19]  }
  0x79   :  { %s155_s21 = sshll.u32 %s1888_s0, 4  ;;  %s156_s21 = int_to_ptr.vmem [resolvable:$true] %s155_s21 }
  0x7a   :  { %s1850_s8 = scalar_lea.vmem %s156_s21, 16  ;;  %s1854_s25 = scalar_lea.vmem %s156_s21, 32 }
  0x7b   :  { %p1851_p8 = scmp.ne.s32.totalorder %s156_s21, %s1850_s8  ;;  %p1855_p9 = scmp.lt.s32.totalorder %s156_s21, %s156_s21 }
  0x7c   :  { %p1856_p10 = scmp.lt.s32.totalorder %s1854_s25, %s1850_s8 }
  0x7e   :  { %p1857_p11 = por %p1856_p10, %p1855_p9 }
  0x80   :  { %p1858_p12 = pnand %p1857_p11, %p1851_p8 }
  0x82   :  { %1861 = shalt.err (!%p1858_p12)
}
  0x83   :  { %158 = dma.hbm_to_vmem [thread:$0]  %s2327_s13, 16, %s156_s21, [#allocation18]  }
  0x84   :  { %1862 = dma.done.wait [#allocation4], 64  }
  0x85   :  { %1863 = vsyncadd [#allocation4], 4294967232 }
  0x86   :  { %1864 = dma.done.wait [#allocation6], 4096  }
  0x87   :  { %1865 = vsyncadd [#allocation6], 4294963200 }
  0x88   :  { %1866 = dma.done.wait [#allocation9], 48  }
  0x89   :  { %1867 = vsyncadd [#allocation9], 4294967248 }
  0x8a   :  { %1868 = dma.done.wait [#allocation12], 8192  }
  0x8b   :  { %1869 = vsyncadd [#allocation12], 4294959104 }
  0x8c   :  { %1870 = dma.done.wait [#allocation15], 4128  }
  0x8d   :  { %1871 = vsyncadd [#allocation15], 4294963168 }
  0x8e   :  { %1872 = dma.done.wait [#allocation18], 32  }
  0x8f   :  { %1873 = vsyncadd [#allocation18], 4294967264  ;;  %v1889_v1 = vmov 0   ;;  %s2344_s1 = sld [smem:[#allocation27_spill]]  ;;  %v455_v3 = vld [vmem:[#allocation7 + $0x78] sm:$0xff]  ;;  %v454_v5 = vld [vmem:[#allocation7 + $0x70] sm:$0xff]  ;;  %v205_v36 = vlaneseq }
  0x90   :  { %1611 = vset.pattern.permute.xlu0 %v1889_v1  ;;  %v439_v4 = vld [vmem:[#allocation5 + $0x78] sm:$0xff]  ;;  %476 = vmatprep.subr.mxu0 %v455_v3  ;;  %v438_v6 = vld [vmem:[#allocation5 + $0x70] sm:$0xff]  ;;  %v453_v7 = vld [vmem:[#allocation7 + $0x68] sm:$0xff]  ;;  %v1890_v35 = vmov 0.0   ;;  %v1891_v54 = vmov 683565275  }
  0x91   :  { %550 = vmatprep.subr.mxu1 %v439_v4  ;;  %v437_v8 = vld [vmem:[#allocation5 + $0x68] sm:$0xff]  ;;  %477 = vmatpush1.msra.mxu0 %v454_v5  ;;  %v452_v9 = vld [vmem:[#allocation7 + $0x60] sm:$0xff]  ;;  %v451_v11 = vld [vmem:[#allocation7 + $0x58] sm:$0xff]  ;;  %v206_v37 = vand.u32 127, %v205_v36  ;;  %v1892_v56 = vmov 2475754826  }
  0x92   :  { %551 = vmatpush1.msra.mxu1 %v438_v6  ;;  %v436_v10 = vld [vmem:[#allocation5 + $0x60] sm:$0xff]  ;;  %478 = vmatprep.subr.mxu0 %v453_v7  ;;  %v435_v12 = vld [vmem:[#allocation5 + $0x58] sm:$0xff]  ;;  %v450_v13 = vld [vmem:[#allocation7 + $0x50] sm:$0xff]  ;;  %v1893_v59 = vmov 2131351028   ;;  %vm456_vm10 = vcmask 523264  }
  0x93   :  { %552 = vmatprep.subr.mxu1 %v437_v8  ;;  %v434_v14 = vld [vmem:[#allocation5 + $0x50] sm:$0xff]  ;;  %479 = vmatpush1.msra.mxu0 %v452_v9  ;;  %v449_v15 = vld [vmem:[#allocation7 + $0x48] sm:$0xff]  ;;  %v448_v17 = vld [vmem:[#allocation7 + $0x40] sm:$0xff]  ;;  %v207_v38 = vcvt.s32.f32 %v206_v37  ;;  %v1894_v62 = vmov 2102212464  }
  0x94   :  { %553 = vmatpush1.msra.mxu1 %v436_v10  ;;  %v433_v16 = vld [vmem:[#allocation5 + $0x48] sm:$0xff]  ;;  %480 = vmatprep.subr.mxu0 %v451_v11  ;;  %v432_v18 = vld [vmem:[#allocation5 + $0x40] sm:$0xff]  ;;  %v447_v19 = vld [vmem:[#allocation7 + $0x38] sm:$0xff]  ;;  %v1895_v1 = vmov 920167782  }
  0x95   :  { %v204_v2 = vld [vmem:[%s2344_s1] sm:$0xf]  ;;  %554 = vmatprep.subr.mxu1 %v435_v12  ;;  %481 = vmatpush1.msra.mxu0 %v450_v13  ;;  %v446_v21 = vld [vmem:[#allocation7 + $0x30] sm:$0xff]  ;;  %v445_v23 = vld [vmem:[#allocation7 + $0x28] sm:$0xff]  ;;  %v208_v39 = vmul.f32 -0.14391157, %v207_v38 }
  0x96   :  { %213 = vperm.xlu0 %1611, %v204_v2   ;;  %555 = vmatpush1.msra.mxu1 %v434_v14  ;;  %v431_v20 = vld [vmem:[#allocation5 + $0x38] sm:$0xff]  ;;  %v430_v22 = vld [vmem:[#allocation5 + $0x30] sm:$0xff]  ;;  %v429_v24 = vld [vmem:[#allocation5 + $0x28] sm:$0xff]  ;;  %v1896_v4 = vmov 1326507024  }
  0x97   :  { %482 = vmatprep.subr.mxu0 %v449_v15  ;;  %556 = vmatprep.subr.mxu1 %v433_v16  ;;  %v444_v25 = vld [vmem:[#allocation7 + $0x20] sm:$0xff]  ;;  %v443_v27 = vld [vmem:[#allocation7 + $0x18] sm:$0xff]  ;;  %v442_v29 = vld [vmem:[#allocation7 + $0x10] sm:$0xff]  ;;  %v209_v40 = vmul.f32 1.442695, %v208_v39 }
  0x98   :  { %483 = vmatpush1.msra.mxu0 %v448_v17  ;;  %557 = vmatpush1.msra.mxu1 %v432_v18  ;;  %v428_v26 = vld [vmem:[#allocation5 + $0x20] sm:$0xff]  ;;  %v427_v28 = vld [vmem:[#allocation5 + $0x18] sm:$0xff]  ;;  %v426_v30 = vld [vmem:[#allocation5 + $0x10] sm:$0xff] }
  0x99   :  { %484 = vmatprep.subr.mxu0 %v447_v19  ;;  %558 = vmatprep.subr.mxu1 %v431_v20  ;;  %v441_v31 = vld [vmem:[#allocation7 + $0x8] sm:$0xff]  ;;  %v440_v33 = vld [vmem:[#allocation7] sm:$0xff]  ;;  %1612 = vpow2.f32 %v209_v40 }
  0x9a   :  { %485 = vmatpush1.msra.mxu0 %v446_v21  ;;  %559 = vmatpush1.msra.mxu1 %v430_v22  ;;  %v425_v32 = vld [vmem:[#allocation5 + $0x8] sm:$0xff]  ;;  %v424_v34 = vld [vmem:[#allocation5] sm:$0xff] }
  0x9b   :  { %486 = vmatprep.subr.mxu0 %v445_v23  ;;  %560 = vmatprep.subr.mxu1 %v429_v24 }
  0x9c   :  { %487 = vmatpush1.msra.mxu0 %v444_v25  ;;  %561 = vmatpush1.msra.mxu1 %v428_v26 }
  0x9d   :  { %488 = vmatprep.subr.mxu0 %v443_v27  ;;  %562 = vmatprep.subr.mxu1 %v427_v28 }
  0x9e   :  { %489 = vmatpush1.msra.mxu0 %v442_v29  ;;  %563 = vmatpush1.msra.mxu1 %v426_v30 }
  0x9f   :  { %490 = vmatprep.subr.mxu0 %v441_v31  ;;  %564 = vmatprep.subr.mxu1 %v425_v32 }
  0xa0   :  { %491 = vmatpush1.msra.mxu0 %v440_v33  ;;  %524 = vmatprep.mubr.f32.mxu0 %v1890_v35 }
  0xa1   :  { %565 = vmatpush1.msra.mxu1 %v424_v34  ;;  %598 = vmatprep.mubr.f32.mxu1 %v1890_v35 }
  0xa6   :  { %v1613_v41 = vpop.eup %1612 }
 0x111   :  { %v214_v42 = vpop.permute.xlu0 %213 }
 0x112   :  { %v2057_v43 = vmul.f32 %v1613_v41, %v214_v42 }
 0x114   :  { %v220_v44 = vand.u32 2139095040, %v2057_v43  ;;  %v217_v48 = vand.u32 2147483647, %v2057_v43  ;;  %vm219_vm7 = vcmp.lt.s32.totalorder %v2057_v43, 0 }
 0x116   :  { %v221_v45 = vshrl.u32 %v220_v44, 23  ;;  %v224_v51 = vand.u32 8388607, %v217_v48  ;;  %vm218_vm8 = vcmp.le.f32.partialorder %v217_v48, 0.7853982 }
 0x118   :  { %v1398_v46 = vadd.s32 4294967169, %v221_v45  ;;  %v225_v6 = vor.u32 8388608, %v224_v51 }
 0x11a   :  { %v227_v47 = vadd.s32 1, %v1398_v46  ;;  %v265_v20 = vshll.u32 %v225_v6, 8 }
 0x11c   :  { %vm228_vm0 = vcmp.gt.s32.totalorder %v227_v47, 0 }
 0x11d   :  { %v229_v49 = vsel %vm228_vm0, %v227_v47, 0  ;;  %vm309_vm0 = vweird.f32 %v2057_v43 }
 0x11e   :  { %v231_v50 = vand.u32 31, %v229_v49  ;;  %v230_v53 = vshrl.u32 %v229_v49, 5 }
 0x120   :  { %v232_v52 = vsub.s32 32, %v231_v50  ;;  %v234_v55 = vshll.u32 %v1891_v54, %v231_v50  ;;  %v237_v57 = vshll.u32 %v1892_v56, %v231_v50  ;;  %v240_v61 = vshll.u32 %v1893_v59, %v231_v50 }
 0x121   :  { %v243_v0 = vshll.u32 %v1894_v62, %v231_v50  ;;  %v246_v3 = vshll.u32 %v1895_v1, %v231_v50  ;;  %vm249_vm1 = vcmp.lt.s32.totalorder %v230_v53, 1  ;;  %vm252_vm2 = vcmp.lt.s32.totalorder %v230_v53, 4 }
 0x122   :  { %v235_v58 = vshrl.u32 %v1892_v56, %v232_v52  ;;  %v238_v60 = vshrl.u32 %v1893_v59, %v232_v52  ;;  %v241_v63 = vshrl.u32 %v1894_v62, %v232_v52  ;;  %v244_v2 = vshrl.u32 %v1895_v1, %v232_v52 }
 0x123   :  { %v247_v5 = vshrl.u32 %v1896_v4, %v232_v52  ;;  %v233_v15 = vshrl.u32 %v1891_v54, %v232_v52  ;;  %vm251_vm3 = vcmp.lt.s32.totalorder %v230_v53, 3  ;;  %vm250_vm4 = vcmp.lt.s32.totalorder %v230_v53, 2 }
 0x124   :  { %v236_v7 = vor.u32 %v235_v58, %v234_v55  ;;  %v239_v8 = vor.u32 %v238_v60, %v237_v57  ;;  %v242_v9 = vor.u32 %v241_v63, %v240_v61  ;;  %v245_v10 = vor.u32 %v244_v2, %v243_v0 }
 0x125   :  { %v248_v11 = vor.u32 %v247_v5, %v246_v3 }
 0x126   :  { %v254_v12 = vsel %vm252_vm2, %v242_v9, 2102212464  ;;  %v257_v13 = vsel %vm249_vm1, %v236_v7, %v239_v8  ;;  %v261_v14 = vsel %vm249_vm1, %v239_v8, %v242_v9  ;;  %v258_v16 = vsel %vm252_vm2, %v245_v10, 920167782 }
 0x127   :  { %v262_v17 = vsel %vm252_vm2, %v248_v11, 1326507024  ;;  %v259_v18 = vsel %vm251_vm3, %v242_v9, %v258_v16  ;;  %v253_v21 = vsel %vm249_vm1, %v233_v15, %v236_v7  ;;  %v255_v22 = vsel %vm251_vm3, %v239_v8, %v254_v12  ;;  %v664_v15 = vld [vmem:[%s2319_s5 + $0xf8] sm:$0xff] }
 0x128   :  { %v263_v19 = vsel %vm251_vm3, %v245_v10, %v262_v17  ;;  %v260_v23 = vsel %vm250_vm4, %v257_v13, %v259_v18  ;;  %v256_v29 = vsel %vm250_vm4, %v253_v21, %v255_v22  ;;  %1423 = vmatprep.subr.mxu0 %v664_v15  ;;  %v648_v16 = vld [vmem:[%s2319_s5 + $0x78] sm:$0xff]  ;;  %v647_v17 = vld [vmem:[%s2319_s5 + $0x70] sm:$0xff]  ;;  %v662_v18 = vld [vmem:[%s2319_s5 + $0xe8] sm:$0xff]  ;;  %vm1897_vm1 = vmmov 0  }
 0x129   :  { %v264_v24 = vsel %vm250_vm4, %v261_v14, %v263_v19  ;;  %v2066_v27 = vmul.u32.u64.low %v265_v20, %v260_v23  ;;  %v2067_v28 = vmul.u32.u64.high %v265_v20, %v260_v23, %v2066_v27  ;;  %v272_v31 = vmul.u32 %v265_v20, %v256_v29  ;;  %v646_v19 = vld [vmem:[%s2319_s5 + $0x68] sm:$0xff]  ;;  %v645_v21 = vld [vmem:[%s2319_s5 + $0x60] sm:$0xff]  ;;  %v660_v22 = vld [vmem:[%s2319_s5 + $0xd8] sm:$0xff] }
 0x12a   :  { %v2063_v25 = vmul.u32.u64.low %v265_v20, %v264_v24  ;;  %v2064_v26 = vmul.u32.u64.high %v265_v20, %v264_v24, %v2063_v25  ;;  %v661_v20 = vld [vmem:[%s2319_s5 + $0xe0] sm:$0xff]  ;;  %v644_v23 = vld [vmem:[%s2319_s5 + $0x58] sm:$0xff]  ;;  %v659_v24 = vld [vmem:[%s2319_s5 + $0xd0] sm:$0xff]  ;;  %vm1285_vm2 = vcmask 130048   ;;  %vm1374_vm3 = vcmask 60416  }
 0x12b   :  { %v275_v30 = vadd.s32 1, %v2067_v28  ;;  %v643_v25 = vld [vmem:[%s2319_s5 + $0x50] sm:$0xff]  ;;  %v641_v29 = vld [vmem:[%s2319_s5 + $0x40] sm:$0xff]  ;;  %vm1386_vm4 = vcmask 3072  }
 0x12c   :  { %vm274_vm5 = vc.u32 %v2064_v26, %v2066_v27  ;;  %v273_v46 = vadd.s32 %v2066_v27, %v2064_v26  ;;  %v658_v26 = vld [vmem:[%s2319_s5 + $0xc8] sm:$0xff] }
 0x12d   :  { %v276_v32 = vsel %vm274_vm5, %v275_v30, %v2067_v28  ;;  %v642_v27 = vld [vmem:[%s2319_s5 + $0x48] sm:$0xff]  ;;  %v657_v28 = vld [vmem:[%s2319_s5 + $0xc0] sm:$0xff]  ;;  %v656_v30 = vld [vmem:[%s2319_s5 + $0xb8] sm:$0xff] }
 0x12e   :  { %v277_v33 = vadd.s32 %v276_v32, %v272_v31  ;;  %v640_v31 = vld [vmem:[%s2319_s5 + $0x38] sm:$0xff]  ;;  %v655_v32 = vld [vmem:[%s2319_s5 + $0xb0] sm:$0xff] }
 0x130   :  { %v278_v34 = vadd.s32 536870912, %v277_v33 }
 0x132   :  { %v279_v37 = vshrl.u32 %v278_v34, 30  ;;  %v654_v34 = vld [vmem:[%s2319_s5 + $0xa8] sm:$0xff] }
 0x134   :  { %v280_v38 = vshll.u32 %v279_v37, 30  ;;  %v303_v60 = vsub.s32 4, %v279_v37 }
 0x136   :  { %v281_v39 = vsub.s32 %v277_v33, %v280_v38  ;;  %v304_v63 = vsel %vm219_vm7, %v303_v60, %v279_v37  ;;  %v639_v33 = vld [vmem:[%s2319_s5 + $0x30] sm:$0xff]  ;;  %v638_v37 = vld [vmem:[%s2319_s5 + $0x28] sm:$0xff]  ;;  %v653_v38 = vld [vmem:[%s2319_s5 + $0xa0] sm:$0xff] }
 0x137   :  { %v306_v0 = vsel %vm218_vm8, 0, %v304_v63  ;;  %v797_v60 = vld [vmem:[#allocation13 + $0xb0] sm:$0xff]  ;;  %v794_v63 = vld [vmem:[#allocation13 + $0x98] sm:$0xff] }
 0x138   :  { %v283_v40 = vsub.s32 0, %v281_v39  ;;  %v413_v1 = vadd.s32 3, %v306_v0  ;;  %v310_v3 = vand.u32 3, %v306_v0  ;;  %v793_v0 = vld [vmem:[#allocation13 + $0x90] sm:$0xff] }
 0x13a   :  { %v1399_v41 = vmin.u32 %v283_v40, %v281_v39  ;;  %v414_v2 = vand.u32 3, %v413_v1  ;;  %vm315_vm11 = vcmp.eq.s32.totalorder %v310_v3, 2  ;;  %vm312_vm13 = vcmp.eq.s32.totalorder %v310_v3, 0  ;;  %v652_v40 = vld [vmem:[%s2319_s5 + $0x98] sm:$0xff] }
 0x13b   :  { %vm311_vm15 = vcmp.lt.s32.totalorder %v310_v3, 2  ;;  %v792_v1 = vld [vmem:[#allocation13 + $0x88] sm:$0xff]  ;;  %v790_v3 = vld [vmem:[#allocation13 + $0x78] sm:$0xff] }
 0x13c   :  { %v285_v42 = vclz %v1399_v41  ;;  %vm419_vm9 = vcmp.eq.s32.totalorder %v414_v2, 2  ;;  %vm416_vm12 = vcmp.eq.s32.totalorder %v414_v2, 0  ;;  %vm415_vm14 = vcmp.lt.s32.totalorder %v414_v2, 2  ;;  %v636_v41 = vld [vmem:[%s2319_s5 + $0x18] sm:$0xff]  ;;  %v791_v2 = vld [vmem:[#allocation13 + $0x80] sm:$0xff] }
 0x13e   :  { %v1400_v44 = vadd.s32 4294967294, %v285_v42  ;;  %v651_v42 = vld [vmem:[%s2319_s5 + $0x90] sm:$0xff] }
 0x140   :  { %vm1401_vm6 = vcmp.lt.s32.totalorder %v1400_v44, 0 }
 0x141   :  { %v288_v45 = vsel %vm1401_vm6, 0, %v1400_v44  ;;  %v635_v44 = vld [vmem:[%s2319_s5 + $0x10] sm:$0xff] }
 0x142   :  { %v289_v47 = vsub.s32 32, %v288_v45  ;;  %v293_v49 = vsub.s32 4294967266, %v288_v45  ;;  %v290_v50 = vshll.u32 %v281_v39, %v288_v45  ;;  %v637_v39 = vld [vmem:[%s2319_s5 + $0x20] sm:$0xff]  ;;  %v650_v45 = vld [vmem:[%s2319_s5 + $0x88] sm:$0xff] }
 0x144   :  { %v291_v51 = vshrl.u32 %v273_v46, %v289_v47  ;;  %v294_v52 = vadd.s32 127, %v293_v49  ;;  %v634_v46 = vld [vmem:[%s2319_s5 + $0x8] sm:$0xff]  ;;  %v649_v47 = vld [vmem:[%s2319_s5 + $0x80] sm:$0xff] }
 0x145   :  { %v633_v49 = vld [vmem:[%s2319_s5] sm:$0xff] }
 0x146   :  { %v292_v53 = vor.u32 %v291_v51, %v290_v50  ;;  %v295_v54 = vshll.u32 %v294_v52, 23  ;;  %v774_v50 = vld [vmem:[#allocation11 + $0xf8] sm:$0xff]  ;;  %v805_v52 = vld [vmem:[#allocation13 + $0xf0] sm:$0xff] }
 0x147   :  { %v806_v51 = vld [vmem:[#allocation13 + $0xf8] sm:$0xff] }
 0x148   :  { %v296_v55 = vor.u32 4788187, %v295_v54  ;;  %v299_v57 = vcvt.s32.f32 %v292_v53  ;;  %807 = vmatprep.subr.mxu1 %v806_v51  ;;  %v804_v53 = vld [vmem:[#allocation13 + $0xe8] sm:$0xff]  ;;  %v803_v54 = vld [vmem:[#allocation13 + $0xe0] sm:$0xff] }
 0x149   :  { %v759_v51 = vld [vmem:[#allocation11 + $0x80] sm:$0xff] }
 0x14a   :  { %v297_v56 = vand.u32 2147483647, %v296_v55  ;;  %v802_v55 = vld [vmem:[#allocation13 + $0xd8] sm:$0xff] }
 0x14c   :  { %v300_v58 = vmul.f32 %v299_v57, %v297_v56  ;;  %v801_v56 = vld [vmem:[#allocation13 + $0xd0] sm:$0xff]  ;;  %v800_v57 = vld [vmem:[#allocation13 + $0xc8] sm:$0xff] }
 0x14e   :  { %v301_v59 = vxor.u32 2147483648, %v300_v58 }
 0x150   :  { %v302_v61 = vsel %vm219_vm7, %v301_v59, %v300_v58  ;;  %v799_v58 = vld [vmem:[#allocation13 + $0xc0] sm:$0xff]  ;;  %v798_v59 = vld [vmem:[#allocation13 + $0xb8] sm:$0xff] }
 0x151   :  { %v305_v62 = vsel %vm218_vm8, %v2057_v43, %v302_v61  ;;  %v663_v43 = vld [vmem:[%s2319_s5 + $0xf0] sm:$0xff] }
 0x152   :  { %1614 = vcosq.f32 %v305_v62  ;;  %v796_v61 = vld [vmem:[#allocation13 + $0xa8] sm:$0xff] }
 0x153   :  { %1616 = vsinq.f32 %v305_v62  ;;  %v795_v62 = vld [vmem:[#allocation13 + $0xa0] sm:$0xff] }
 0x15f   :  { %v1615_v4 = vpop.eup %1614 }
 0x160   :  { %v1617_v5 = vpop.eup %1616  ;;  %v316_v6 = vxor.u32 2147483648, %v1615_v4 }
 0x161   :  { %v313_v7 = vxor.u32 2147483648, %v1617_v5 }
 0x162   :  { %v421_v8 = vsel %vm419_vm9, %v316_v6, %v1617_v5  ;;  %v317_v48 = vsel %vm315_vm11, %v316_v6, %v1617_v5  ;;  %v788_v5 = vld [vmem:[#allocation13 + $0x68] sm:$0xff]  ;;  %v787_v6 = vld [vmem:[#allocation13 + $0x60] sm:$0xff] }
 0x163   :  { %v418_v9 = vsel %vm416_vm12, %v1615_v4, %v313_v7  ;;  %v314_v10 = vsel %vm312_vm13, %v1615_v4, %v313_v7  ;;  %v789_v4 = vld [vmem:[#allocation13 + $0x70] sm:$0xff]  ;;  %v786_v7 = vld [vmem:[#allocation13 + $0x58] sm:$0xff] }
 0x164   :  { %v422_v11 = vsel %vm415_vm14, %v418_v9, %v421_v8  ;;  %v318_v12 = vsel %vm311_vm15, %v314_v10, %v317_v48  ;;  %v785_v8 = vld [vmem:[#allocation13 + $0x50] sm:$0xff]  ;;  %v784_v48 = vld [vmem:[#allocation13 + $0x48] sm:$0xff]  ;;  %v783_v9 = vld [vmem:[#allocation13 + $0x40] sm:$0xff] }
 0x165   :  { %v423_v13 = vsel %vm309_vm0, nan, %v422_v11  ;;  %v319_v14 = vsel %vm309_vm0, nan, %v318_v12  ;;  %v782_v10 = vld [vmem:[#allocation13 + $0x38] sm:$0xff]  ;;  %v2178_v11 = vshrl.u32 %v205_v36, 7 }
 0x166   :  { %1406 = vmatmul.mubr.msk.f32.vlgmr.msra.gmra.mxu0 %vm456_vm10, %v423_v13  ;;  %1407 = vmatmul.mubr.msk.f32.vlgmr.msra.gmra.mxu1 %vm456_vm10, %v319_v14  ;;  %v605_v13 = vld [vmem:[#allocation8] sm:$0x3] }
 0x167   :  { %871 = vmatprep.mubr.f32.mxu1 %v1890_v35  ;;  %1424 = vmatpush3.msra.mxu0 %v648_v16  ;;  %v609_v12 = vsub.s32 0, %v2178_v11  ;;  %v613_v14 = vsub.s32 1, %v2178_v11  ;;  %v1095_v11 = vld [vmem:[%s2326_s12 + $0x70] sm:$0xff] }
 0x168   :  { %1425 = vmatprep.subr.mxu0 %v663_v43  ;;  %808 = vmatpush1.msra.mxu1 %v805_v52  ;;  %v758_v52 = vld [vmem:[#allocation11 + $0x78] sm:$0xff] }
 0x169   :  { %1426 = vmatpush3.msra.mxu0 %v647_v17  ;;  %809 = vmatprep.subr.mxu1 %v804_v53  ;;  %v610_v15 = vrot.slane %v605_v13, %v609_v12  ;;  %v757_v53 = vld [vmem:[#allocation11 + $0x70] sm:$0xff] }
 0x16a   :  { %1427 = vmatprep.subr.mxu0 %v662_v18  ;;  %810 = vmatpush1.msra.mxu1 %v803_v54  ;;  %v614_v18 = vrot.slane %v605_v13, %v613_v14  ;;  %v756_v54 = vld [vmem:[#allocation11 + $0x68] sm:$0xff]  ;;  %v996_v13 = vld [vmem:[#allocation16 + $0xf8] sm:$0xff] }
 0x16b   :  { %1428 = vmatpush3.msra.mxu0 %v646_v19  ;;  %811 = vmatprep.subr.mxu1 %v802_v55  ;;  %v755_v55 = vld [vmem:[#allocation11 + $0x60] sm:$0xff] }
 0x16c   :  { %1429 = vmatprep.subr.mxu0 %v661_v20  ;;  %812 = vmatpush1.msra.mxu1 %v801_v56  ;;  %v754_v56 = vld [vmem:[#allocation11 + $0x58] sm:$0xff] }
 0x16d   :  { %1430 = vmatpush3.msra.mxu0 %v645_v21  ;;  %813 = vmatprep.subr.mxu1 %v800_v57  ;;  %v753_v57 = vld [vmem:[#allocation11 + $0x50] sm:$0xff] }
 0x16e   :  { %1431 = vmatprep.subr.mxu0 %v660_v22  ;;  %814 = vmatpush1.msra.mxu1 %v799_v58  ;;  %v752_v58 = vld [vmem:[#allocation11 + $0x48] sm:$0xff] }
 0x16f   :  { %1432 = vmatpush3.msra.mxu0 %v644_v23  ;;  %815 = vmatprep.subr.mxu1 %v798_v59  ;;  %v751_v59 = vld [vmem:[#allocation11 + $0x40] sm:$0xff] }
 0x170   :  { %1433 = vmatprep.subr.mxu0 %v659_v24  ;;  %816 = vmatpush1.msra.mxu1 %v797_v60  ;;  %v750_v60 = vld [vmem:[#allocation11 + $0x38] sm:$0xff] }
 0x171   :  { %1434 = vmatpush3.msra.mxu0 %v643_v25  ;;  %817 = vmatprep.subr.mxu1 %v796_v61  ;;  %v749_v61 = vld [vmem:[#allocation11 + $0x30] sm:$0xff] }
 0x172   :  { %1435 = vmatprep.subr.mxu0 %v658_v26  ;;  %818 = vmatpush1.msra.mxu1 %v795_v62  ;;  %v748_v62 = vld [vmem:[#allocation11 + $0x28] sm:$0xff] }
 0x173   :  { %1436 = vmatpush3.msra.mxu0 %v642_v27  ;;  %819 = vmatprep.subr.mxu1 %v794_v63  ;;  %v781_v63 = vld [vmem:[#allocation13 + $0x30] sm:$0xff] }
 0x174   :  { %1437 = vmatprep.subr.mxu0 %v657_v28  ;;  %820 = vmatpush1.msra.mxu1 %v793_v0  ;;  %v747_v0 = vld [vmem:[#allocation11 + $0x20] sm:$0xff] }
 0x175   :  { %1438 = vmatpush3.msra.mxu0 %v641_v29  ;;  %821 = vmatprep.subr.mxu1 %v792_v1  ;;  %v780_v1 = vld [vmem:[#allocation13 + $0x28] sm:$0xff] }
 0x176   :  { %1439 = vmatprep.subr.mxu0 %v656_v30  ;;  %822 = vmatpush1.msra.mxu1 %v791_v2  ;;  %v746_v2 = vld [vmem:[#allocation11 + $0x18] sm:$0xff] }
 0x177   :  { %1440 = vmatpush3.msra.mxu0 %v640_v31  ;;  %823 = vmatprep.subr.mxu1 %v790_v3  ;;  %v779_v3 = vld [vmem:[#allocation13 + $0x20] sm:$0xff] }
 0x178   :  { %1441 = vmatprep.subr.mxu0 %v655_v32  ;;  %824 = vmatpush1.msra.mxu1 %v789_v4  ;;  %v745_v4 = vld [vmem:[#allocation11 + $0x10] sm:$0xff] }
 0x179   :  { %1442 = vmatpush3.msra.mxu0 %v639_v33  ;;  %825 = vmatprep.subr.mxu1 %v788_v5  ;;  %v773_v33 = vld [vmem:[#allocation11 + $0xf0] sm:$0xff]  ;;  %v778_v5 = vld [vmem:[#allocation13 + $0x18] sm:$0xff] }
 0x17a   :  { %1443 = vmatprep.subr.mxu0 %v654_v34  ;;  %826 = vmatpush1.msra.mxu1 %v787_v6  ;;  %v772_v34 = vld [vmem:[#allocation11 + $0xe8] sm:$0xff] }
 0x17b   :  { %1444 = vmatpush3.msra.mxu0 %v638_v37  ;;  %827 = vmatprep.subr.mxu1 %v786_v7  ;;  %v771_v37 = vld [vmem:[#allocation11 + $0xe0] sm:$0xff]  ;;  %v744_v6 = vld [vmem:[#allocation11 + $0x8] sm:$0xff]  ;;  %v777_v7 = vld [vmem:[#allocation13 + $0x10] sm:$0xff] }
 0x17c   :  { %1445 = vmatprep.subr.mxu0 %v653_v38  ;;  %828 = vmatpush1.msra.mxu1 %v785_v8  ;;  %v770_v38 = vld [vmem:[#allocation11 + $0xd8] sm:$0xff]  ;;  %v743_v8 = vld [vmem:[#allocation11] sm:$0xff] }
 0x17d   :  { %1446 = vmatpush3.msra.mxu0 %v637_v39  ;;  %829 = vmatprep.subr.mxu1 %v784_v48  ;;  %v769_v39 = vld [vmem:[#allocation11 + $0xd0] sm:$0xff]  ;;  %v776_v48 = vld [vmem:[#allocation13 + $0x8] sm:$0xff] }
 0x17e   :  { %1447 = vmatprep.subr.mxu0 %v652_v40  ;;  %830 = vmatpush1.msra.mxu1 %v783_v9  ;;  %v768_v40 = vld [vmem:[#allocation11 + $0xc8] sm:$0xff]  ;;  %v742_v9 = vld [vmem:[#allocation3] sm:$0xf] }
 0x17f   :  { %1448 = vmatpush3.msra.mxu0 %v636_v41  ;;  %831 = vmatprep.subr.mxu1 %v782_v10  ;;  %v767_v41 = vld [vmem:[#allocation11 + $0xc0] sm:$0xff] }
 0x180   :  { %1449 = vmatprep.subr.mxu0 %v651_v42  ;;  %v766_v42 = vld [vmem:[#allocation11 + $0xb8] sm:$0xff]  ;;  %832 = vmatpush1.msra.mxu1 %v781_v63  ;;  %v775_v10 = vld [vmem:[#allocation13] sm:$0xff] }
 0x181   :  { %1450 = vmatpush3.msra.mxu0 %v635_v44  ;;  %v765_v44 = vld [vmem:[#allocation11 + $0xb0] sm:$0xff]  ;;  %833 = vmatprep.subr.mxu1 %v780_v1 }
 0x182   :  { %1451 = vmatprep.subr.mxu0 %v650_v45  ;;  %v764_v45 = vld [vmem:[#allocation11 + $0xa8] sm:$0xff]  ;;  %834 = vmatpush1.msra.mxu1 %v779_v3 }
 0x183   :  { %1452 = vmatpush3.msra.mxu0 %v634_v46  ;;  %v763_v46 = vld [vmem:[#allocation11 + $0xa0] sm:$0xff]  ;;  %835 = vmatprep.subr.mxu1 %v778_v5  ;;  %v1092_v3 = vld [vmem:[%s2326_s12 + $0x58] sm:$0xff] }
 0x184   :  { %1453 = vmatprep.subr.mxu0 %v649_v47  ;;  %v762_v47 = vld [vmem:[#allocation11 + $0x98] sm:$0xff]  ;;  %836 = vmatpush1.msra.mxu1 %v777_v7  ;;  %v1088_v7 = vld [vmem:[%s2326_s12 + $0x38] sm:$0xff] }
 0x185   :  { %1454 = vmatpush3.msra.mxu0 %v633_v49  ;;  %v761_v49 = vld [vmem:[#allocation11 + $0x90] sm:$0xff]  ;;  %837 = vmatprep.subr.mxu1 %v776_v48  ;;  %v1090_v5 = vld [vmem:[%s2326_s12 + $0x48] sm:$0xff] }
 0x186   :  { %878 = vmatprep.subr.mxu0 %v774_v50  ;;  %v760_v50 = vld [vmem:[#allocation11 + $0x88] sm:$0xff]  ;;  %838 = vmatpush1.msra.mxu1 %v775_v10  ;;  %v1086_v48 = vld [vmem:[%s2326_s12 + $0x28] sm:$0xff] }
 0x187   :  { %1458 = vmatprep.subr.mxu1 %v996_v13  ;;  %v1084_v10 = vld [vmem:[%s2326_s12 + $0x18] sm:$0xff]  ;;  %v1083_v13 = vld [vmem:[%s2326_s12 + $0x10] sm:$0xff] }
 0x226   :  { %v526_v16 = vpop.f32.mrf.mxu0  ;;  %v600_v43 = vpop.f32.mrf.mxu1 }
 0x227   :  { %v601_v17 = vadd.f32 %v600_v43, %v526_v16  ;;  %v1410_v16 = vld [vmem:[#allocation10] ss:$0 sm:$0xff] }
 0x228   :  { %v528_v19 = vpop.f32.mrf.mxu0  ;;  %v602_v20 = vpop.f32.mrf.mxu1 }
 0x229   :  { %v617_v21 = vadd.f32 %v610_v15, %v601_v17  ;;  %v603_v22 = vadd.f32 %v602_v20, %v528_v19  ;;  %v980_v19 = vld [vmem:[#allocation16 + $0x78] sm:$0xff]  ;;  %v995_v20 = vld [vmem:[#allocation16 + $0xf0] sm:$0xff] }
 0x22b   :  { %v1408_v36 = vmul.f32 -1.442695, %v617_v21  ;;  %v618_v23 = vadd.f32 %v614_v18, %v603_v22  ;;  %v994_v22 = vld [vmem:[#allocation16 + $0xe8] sm:$0xff] }
 0x22d   :  { %1618 = vpow2.f32 %v1408_v36  ;;  %v1409_v24 = vmul.f32 -1.442695, %v618_v23  ;;  %v978_v36 = vld [vmem:[#allocation16 + $0x68] sm:$0xff] }
 0x22f   :  { %1620 = vpow2.f32 %v1409_v24  ;;  %v977_v24 = vld [vmem:[#allocation16 + $0x60] sm:$0xff] }
 0x23a   :  { %v1619_v25 = vpop.eup %1618 }
 0x23b   :  { %v625_v26 = vadd.f32 1.0, %v1619_v25  ;;  %v992_v25 = vld [vmem:[#allocation16 + $0xd8] sm:$0xff] }
 0x23c   :  { %v1621_v27 = vpop.eup %1620 }
 0x23d   :  { %v626_v28 = vadd.f32 1.0, %v1621_v27  ;;  %1622 = vrcp.f32 %v625_v26  ;;  %v976_v26 = vld [vmem:[#allocation16 + $0x58] sm:$0xff]  ;;  %v991_v27 = vld [vmem:[#allocation16 + $0xd0] sm:$0xff] }
 0x23f   :  { %1624 = vrcp.f32 %v626_v28  ;;  %v975_v28 = vld [vmem:[#allocation16 + $0x50] sm:$0xff] }
 0x24a   :  { %v1623_v29 = vpop.eup %1622 }
 0x24b   :  { %v631_v32 = vmul.f32 %v1623_v29, %v617_v21  ;;  %v979_v21 = vld [vmem:[#allocation16 + $0x70] sm:$0xff]  ;;  %v990_v29 = vld [vmem:[#allocation16 + $0xc8] sm:$0xff] }
 0x24c   :  { %v1625_v30 = vpop.eup %1624 }
 0x24d   :  { %v632_v31 = vmul.f32 %v1625_v30, %v618_v23  ;;  %v993_v23 = vld [vmem:[#allocation16 + $0xe0] sm:$0xff]  ;;  %v974_v30 = vld [vmem:[#allocation16 + $0x48] sm:$0xff] }
 0x24f   :  { %736 = vmatprep.mubr.f32.mxu0 %v632_v31  ;;  %v989_v31 = vld [vmem:[#allocation16 + $0xc0] sm:$0xff] }
 0x250   :  { %737 = vmatmul.mubr.f32.vlgmr.msra.gmra.mxu0 %v631_v32  ;;  %v973_v32 = vld [vmem:[#allocation16 + $0x40] sm:$0xff] }
 0x251   :  { %879 = vmatpush1.msra.mxu0 %v773_v33  ;;  %942 = vmatprep.mubr.f32.mxu0 %v1890_v35  ;;  %v988_v33 = vld [vmem:[#allocation16 + $0xb8] sm:$0xff] }
 0x252   :  { %880 = vmatprep.subr.mxu0 %v772_v34  ;;  %v972_v34 = vld [vmem:[#allocation16 + $0x38] sm:$0xff] }
 0x253   :  { %881 = vmatpush1.msra.mxu0 %v771_v37  ;;  %v987_v37 = vld [vmem:[#allocation16 + $0xb0] sm:$0xff] }
 0x254   :  { %882 = vmatprep.subr.mxu0 %v770_v38  ;;  %v971_v38 = vld [vmem:[#allocation16 + $0x30] sm:$0xff] }
 0x255   :  { %883 = vmatpush1.msra.mxu0 %v769_v39  ;;  %v986_v39 = vld [vmem:[#allocation16 + $0xa8] sm:$0xff] }
 0x256   :  { %884 = vmatprep.subr.mxu0 %v768_v40  ;;  %v970_v40 = vld [vmem:[#allocation16 + $0x28] sm:$0xff] }
 0x257   :  { %885 = vmatpush1.msra.mxu0 %v767_v41  ;;  %v985_v41 = vld [vmem:[#allocation16 + $0xa0] sm:$0xff] }
 0x258   :  { %886 = vmatprep.subr.mxu0 %v766_v42  ;;  %v969_v42 = vld [vmem:[#allocation16 + $0x20] sm:$0xff] }
 0x259   :  { %887 = vmatpush1.msra.mxu0 %v765_v44  ;;  %v984_v44 = vld [vmem:[#allocation16 + $0x98] sm:$0xff] }
 0x25a   :  { %888 = vmatprep.subr.mxu0 %v764_v45  ;;  %v968_v45 = vld [vmem:[#allocation16 + $0x18] sm:$0xff] }
 0x25b   :  { %889 = vmatpush1.msra.mxu0 %v763_v46  ;;  %v983_v46 = vld [vmem:[#allocation16 + $0x90] sm:$0xff] }
 0x25c   :  { %890 = vmatprep.subr.mxu0 %v762_v47  ;;  %v967_v47 = vld [vmem:[#allocation16 + $0x10] sm:$0xff] }
 0x25d   :  { %891 = vmatpush1.msra.mxu0 %v761_v49  ;;  %v982_v49 = vld [vmem:[#allocation16 + $0x88] sm:$0xff] }
 0x25e   :  { %892 = vmatprep.subr.mxu0 %v760_v50  ;;  %v966_v50 = vld [vmem:[#allocation16 + $0x8] sm:$0xff] }
 0x25f   :  { %893 = vmatpush1.msra.mxu0 %v759_v51  ;;  %v981_v51 = vld [vmem:[#allocation16 + $0x80] sm:$0xff] }
 0x260   :  { %894 = vmatprep.subr.mxu0 %v758_v52  ;;  %v965_v52 = vld [vmem:[#allocation16] sm:$0xff] }
 0x261   :  { %895 = vmatpush1.msra.mxu0 %v757_v53  ;;  %v949_v53 = vld [vmem:[#allocation14] sm:$0x3] }
 0x262   :  { %896 = vmatprep.subr.mxu0 %v756_v54 }
 0x263   :  { %897 = vmatpush1.msra.mxu0 %v755_v55 }
 0x264   :  { %898 = vmatprep.subr.mxu0 %v754_v56  ;;  %v954_v56 = vrot.slane %v949_v53, %v609_v12  ;;  %v1094_v12 = vld [vmem:[%s2326_s12 + $0x68] sm:$0xff] }
 0x265   :  { %899 = vmatpush1.msra.mxu0 %v753_v57 }
 0x266   :  { %900 = vmatprep.subr.mxu0 %v752_v58  ;;  %v958_v58 = vrot.slane %v949_v53, %v613_v14  ;;  %v1093_v14 = vld [vmem:[%s2326_s12 + $0x60] sm:$0xff] }
 0x267   :  { %901 = vmatpush1.msra.mxu0 %v751_v59 }
 0x268   :  { %902 = vmatprep.subr.mxu0 %v750_v60 }
 0x269   :  { %903 = vmatpush1.msra.mxu0 %v749_v61 }
 0x26a   :  { %904 = vmatprep.subr.mxu0 %v748_v62 }
 0x26b   :  { %905 = vmatpush1.msra.mxu0 %v747_v0 }
 0x26c   :  { %906 = vmatprep.subr.mxu0 %v746_v2  ;;  %v1096_v2 = vld [vmem:[%s2326_s12 + $0x78] sm:$0xff] }
 0x26d   :  { %907 = vmatpush1.msra.mxu0 %v745_v4  ;;  %v1091_v4 = vld [vmem:[%s2326_s12 + $0x50] sm:$0xff] }
 0x26e   :  { %908 = vmatprep.subr.mxu0 %v744_v6  ;;  %v1089_v6 = vld [vmem:[%s2326_s12 + $0x40] sm:$0xff] }
 0x26f   :  { %909 = vmatpush1.msra.mxu0 %v743_v8  ;;  %v1087_v8 = vld [vmem:[%s2326_s12 + $0x30] sm:$0xff] }
 0x270   :  { %943 = vmatmul.mubr.f32.vlgmr.msra.gmra.mxu0 %v742_v9  ;;  %1522 = vmatprep.subr.mxu0 %v1890_v35  ;;  %v1085_v9 = vld [vmem:[%s2326_s12 + $0x20] sm:$0xff] }
 0x271   :  { %1523 = vmatpush3.msra.mxu0 %v1096_v2  ;;  %1554 = vmatprep.mubr.msk.f32.mxu0 %vm1897_vm1, %v1890_v35 }
 0x272   :  { %1524 = vmatprep.subr.mxu0 %v1890_v35 }
 0x273   :  { %1525 = vmatpush3.msra.mxu0 %v1095_v11 }
 0x274   :  { %1526 = vmatprep.subr.mxu0 %v1890_v35 }
 0x275   :  { %1527 = vmatpush3.msra.mxu0 %v1094_v12  ;;  %v1422_v12 = vld [vmem:[#allocation2] ss:$0 sm:$0xff] }
 0x276   :  { %1528 = vmatprep.subr.mxu0 %v1890_v35 }
 0x277   :  { %1529 = vmatpush3.msra.mxu0 %v1093_v14 }
 0x278   :  { %1530 = vmatprep.subr.mxu0 %v1890_v35 }
 0x279   :  { %1531 = vmatpush3.msra.mxu0 %v1092_v3 }
 0x27a   :  { %1532 = vmatprep.subr.mxu0 %v1890_v35 }
 0x27b   :  { %1533 = vmatpush3.msra.mxu0 %v1091_v4 }
 0x27c   :  { %1534 = vmatprep.subr.mxu0 %v1890_v35 }
 0x27d   :  { %1535 = vmatpush3.msra.mxu0 %v1090_v5 }
 0x27e   :  { %1536 = vmatprep.subr.mxu0 %v1890_v35 }
 0x27f   :  { %1537 = vmatpush3.msra.mxu0 %v1089_v6 }
 0x280   :  { %1538 = vmatprep.subr.mxu0 %v1890_v35 }
 0x281   :  { %1539 = vmatpush3.msra.mxu0 %v1088_v7 }
 0x282   :  { %1540 = vmatprep.subr.mxu0 %v1890_v35 }
 0x283   :  { %1541 = vmatpush3.msra.mxu0 %v1087_v8 }
 0x284   :  { %1542 = vmatprep.subr.mxu0 %v1890_v35 }
 0x285   :  { %1543 = vmatpush3.msra.mxu0 %v1086_v48 }
 0x286   :  { %1544 = vmatprep.subr.mxu0 %v1890_v35 }
 0x287   :  { %1545 = vmatpush3.msra.mxu0 %v1085_v9 }
 0x288   :  { %1546 = vmatprep.subr.mxu0 %v1890_v35 }
 0x289   :  { %1547 = vmatpush3.msra.mxu0 %v1084_v10 }
 0x28a   :  { %1548 = vmatprep.subr.mxu0 %v1890_v35 }
 0x28b   :  { %1549 = vmatpush3.msra.mxu0 %v1083_v13 }
 0x28c   :  { %1550 = vmatprep.subr.mxu0 %v1890_v35 }
 0x310   :  { %v1455_v15 = vpop.f32.mrf.mxu0 }
 0x312   :  { %v1456_v43 = vpop.f32.mrf.mxu0 }
 0x313   :  { %v1457_v17 = vadd.f32 %v1456_v43, %v1455_v15  ;;  %v1082_v15 = vld [vmem:[%s2326_s12 + $0x8] sm:$0xff] }
 0x314   :  { %1551 = vmatpush3.msra.mxu0 %v1082_v15 }
 0x315   :  { %v739_v18 = vadd.f32 %v1457_v17, %v1410_v16  ;;  %v1081_v16 = vld [vmem:[%s2326_s12] sm:$0xff]  ;;  %1552 = vmatprep.subr.mxu0 %v1890_v35  ;;  %v1411_v17 = vld [vmem:[#allocation17] ss:$0 sm:$0xff] }
 0x316   :  { %1553 = vmatpush3.msra.mxu0 %v1081_v16 }
 0x317   :  { %872 = vmatmul.mubr.f32.vlgmr.msra.gmra.mxu1 %v739_v18 }
 0x318   :  { %1459 = vmatpush3.msra.mxu1 %v980_v19 }
 0x319   :  { %1460 = vmatprep.subr.mxu1 %v995_v20 }
 0x31a   :  { %1461 = vmatpush3.msra.mxu1 %v979_v21 }
 0x31b   :  { %1462 = vmatprep.subr.mxu1 %v994_v22 }
 0x31c   :  { %1463 = vmatpush3.msra.mxu1 %v978_v36 }
 0x31d   :  { %1464 = vmatprep.subr.mxu1 %v993_v23 }
 0x31e   :  { %1465 = vmatpush3.msra.mxu1 %v977_v24 }
 0x31f   :  { %1466 = vmatprep.subr.mxu1 %v992_v25  ;;  %v1188_v25 = vld [vmem:[%s2328_s14 + $0x38] sm:$0xff] }
 0x320   :  { %1467 = vmatpush3.msra.mxu1 %v976_v26  ;;  %v1187_v26 = vld [vmem:[%s2328_s14 + $0x30] sm:$0xff] }
 0x321   :  { %1468 = vmatprep.subr.mxu1 %v991_v27  ;;  %v1186_v27 = vld [vmem:[%s2328_s14 + $0x28] sm:$0xff] }
 0x322   :  { %1469 = vmatpush3.msra.mxu1 %v975_v28  ;;  %v1185_v28 = vld [vmem:[%s2328_s14 + $0x20] sm:$0xff] }
 0x323   :  { %1470 = vmatprep.subr.mxu1 %v990_v29  ;;  %v1184_v29 = vld [vmem:[%s2328_s14 + $0x18] sm:$0xff] }
 0x324   :  { %1471 = vmatpush3.msra.mxu1 %v974_v30  ;;  %v1183_v30 = vld [vmem:[%s2328_s14 + $0x10] sm:$0xff] }
 0x325   :  { %1472 = vmatprep.subr.mxu1 %v989_v31  ;;  %v1182_v31 = vld [vmem:[%s2328_s14 + $0x8] sm:$0xff] }
 0x326   :  { %1473 = vmatpush3.msra.mxu1 %v973_v32  ;;  %v1181_v32 = vld [vmem:[%s2328_s14] sm:$0xff] }
 0x327   :  { %1474 = vmatprep.subr.mxu1 %v988_v33  ;;  %v1413_v33 = vld [vmem:[#allocation19] ss:$0 sm:$0xff] }
 0x328   :  { %1475 = vmatpush3.msra.mxu1 %v972_v34 }
 0x329   :  { %1476 = vmatprep.subr.mxu1 %v987_v37 }
 0x32a   :  { %1477 = vmatpush3.msra.mxu1 %v971_v38 }
 0x32b   :  { %1478 = vmatprep.subr.mxu1 %v986_v39 }
 0x32c   :  { %1479 = vmatpush3.msra.mxu1 %v970_v40 }
 0x32d   :  { %1480 = vmatprep.subr.mxu1 %v985_v41 }
 0x32e   :  { %1481 = vmatpush3.msra.mxu1 %v969_v42 }
 0x32f   :  { %1482 = vmatprep.subr.mxu1 %v984_v44 }
 0x330   :  { %1483 = vmatpush3.msra.mxu1 %v968_v45  ;;  %v944_v54 = vpop.f32.mrf.mxu0  ;;  %v1277_v45 = vld [vmem:[%s2330_s16 + $0x8] sm:$0xff] }
 0x331   :  { %1484 = vmatprep.subr.mxu1 %v983_v46  ;;  %v1276_v46 = vld [vmem:[%s2330_s16] sm:$0xff] }
 0x332   :  { %1485 = vmatpush3.msra.mxu1 %v967_v47  ;;  %v946_v59 = vpop.f32.mrf.mxu0  ;;  %v1415_v47 = vld [vmem:[%s2329_s15] ss:$0 sm:$0xff] }
 0x333   :  { %1486 = vmatprep.subr.mxu1 %v982_v49 }
 0x334   :  { %1487 = vmatpush3.msra.mxu1 %v966_v50 }
 0x335   :  { %1488 = vmatprep.subr.mxu1 %v981_v51 }
 0x336   :  { %1489 = vmatpush3.msra.mxu1 %v965_v52 }
 0x337   :  { %1557 = vmatprep.subr.mxu1 %v1890_v35 }
 0x3d7   :  { %v873_v55 = vpop.f32.mrf.mxu1 }
 0x3d8   :  { %v945_v57 = vadd.f32 %v944_v54, %v873_v55 }
 0x3d9   :  { %v875_v60 = vpop.f32.mrf.mxu1 }
 0x3da   :  { %v947_v61 = vadd.f32 %v946_v59, %v875_v60  ;;  %v961_v62 = vadd.f32 %v954_v56, %v945_v57 }
 0x3dc   :  { %v962_v63 = vadd.f32 %v958_v58, %v947_v61  ;;  %v963_v1 = vmax.f32 %v961_v62, 0.0 }
 0x3de   :  { %v964_v0 = vmax.f32 %v962_v63, 0.0 }
 0x3e0   :  { %1068 = vmatprep.mubr.f32.mxu1 %v964_v0  ;;  %v1421_v0 = vld [vmem:[%s2332_s18] ss:$0 sm:$0xff] }
 0x3e1   :  { %1069 = vmatmul.mubr.f32.vlgmr.msra.gmra.mxu1 %v963_v1 }
 0x3e2   :  { %1573 = vmatprep.mubr.msk.f32.mxu1 %vm1897_vm1, %v1890_v35  ;;  %1558 = vmatpush3.msra.mxu1 %v1188_v25 }
 0x3e3   :  { %1559 = vmatprep.subr.mxu1 %v1890_v35 }
 0x3e4   :  { %1560 = vmatpush3.msra.mxu1 %v1187_v26 }
 0x3e5   :  { %1561 = vmatprep.subr.mxu1 %v1890_v35 }
 0x3e6   :  { %1562 = vmatpush3.msra.mxu1 %v1186_v27 }
 0x3e7   :  { %1563 = vmatprep.subr.mxu1 %v1890_v35 }
 0x3e8   :  { %1564 = vmatpush3.msra.mxu1 %v1185_v28 }
 0x3e9   :  { %1565 = vmatprep.subr.mxu1 %v1890_v35 }
 0x3ea   :  { %1566 = vmatpush3.msra.mxu1 %v1184_v29 }
 0x3eb   :  { %1567 = vmatprep.subr.mxu1 %v1890_v35 }
 0x3ec   :  { %1568 = vmatpush3.msra.mxu1 %v1183_v30 }
 0x3ed   :  { %1569 = vmatprep.subr.mxu1 %v1890_v35 }
 0x3ee   :  { %1570 = vmatpush3.msra.mxu1 %v1182_v31 }
 0x3ef   :  { %1571 = vmatprep.subr.mxu1 %v1890_v35 }
 0x3f0   :  { %1572 = vmatpush3.msra.mxu1 %v1181_v32 }
 0x3f1   :  { %1576 = vmatprep.subr.mxu1 %v1890_v35 }
 0x4a1   :  { %v1490_v43 = vpop.f32.mrf.mxu1 }
 0x4a3   :  { %v1491_v18 = vpop.f32.mrf.mxu1 }
 0x4a4   :  { %v1492_v19 = vadd.f32 %v1491_v18, %v1490_v43 }
 0x4a6   :  { %v1071_v20 = vadd.f32 %v1492_v19, %v1411_v17 }
 0x4a8   :  { %v1412_v21 = vmul.f32 -1.442695, %v1071_v20 }
 0x4aa   :  { %1626 = vpow2.f32 %v1412_v21 }
 0x4b7   :  { %v1627_v22 = vpop.eup %1626 }
 0x4b8   :  { %v1077_v36 = vadd.f32 1.0, %v1627_v22 }
 0x4ba   :  { %1628 = vrcp.f32 %v1077_v36 }
 0x4c7   :  { %v1629_v23 = vpop.eup %1628 }
 0x4c8   :  { %v1080_v24 = vmul.f32 %v1629_v23, %v1071_v20 }
 0x4ca   :  { %1555 = vmatmul.mubr.f32.vlgmr.msra.gmra.mxu0 %v1080_v24 }
 0x58a   :  { %v1170_v34 = vpop.f32.mrf.mxu0 }
 0x58b   :  { %v1171_v37 = vadd.f32 %v1413_v33, %v1170_v34 }
 0x58c   :  { %v1556_v38 = vpop.f32.mrf.mxu0 }
 0x58d   :  { %v1414_v39 = vmul.f32 -1.442695, %v1171_v37 }
 0x58f   :  { %1630 = vpow2.f32 %v1414_v39 }
 0x59c   :  { %v1631_v40 = vpop.eup %1630 }
 0x59d   :  { %v1177_v41 = vadd.f32 1.0, %v1631_v40 }
 0x59f   :  { %1632 = vrcp.f32 %v1177_v41 }
 0x5ac   :  { %v1633_v42 = vpop.eup %1632 }
 0x5ad   :  { %v1180_v44 = vmul.f32 %v1633_v42, %v1171_v37 }
 0x5af   :  { %1574 = vmatmul.mubr.msk.f32.vlgmr.msra.gmra.mxu1 %vm456_vm10, %v1180_v44 }
 0x5b0   :  { %1580 = vmatprep.mubr.msk.f32.mxu1 %vm1897_vm1, %v1890_v35  ;;  %1577 = vmatpush3.msra.mxu1 %v1277_v45 }
 0x5b1   :  { %1578 = vmatprep.subr.mxu1 %v1890_v35  ;;  %v1418_v35 = vld [vmem:[%s2331_s17] ss:$0 sm:$0xff] }
 0x5b2   :  { %1579 = vmatpush3.msra.mxu1 %v1276_v46 }
 0x66f   :  { %v1265_v49 = vpop.f32.mrf.mxu1 }
 0x670   :  { %v1266_v50 = vadd.f32 %v1415_v47, %v1265_v49 }
 0x671   :  { %v1575_v51 = vpop.f32.mrf.mxu1 }
 0x672   :  { %v1417_v52 = vmul.f32 -1.442695, %v1266_v50 }
 0x674   :  { %1634 = vpow2.f32 %v1417_v52 }
 0x681   :  { %v1635_v53 = vpop.eup %1634 }
 0x682   :  { %v1272_v54 = vadd.f32 1.0, %v1635_v53 }
 0x684   :  { %1636 = vrcp.f32 %v1272_v54 }
 0x691   :  { %v1637_v55 = vpop.eup %1636 }
 0x692   :  { %v1275_v56 = vmul.f32 %v1637_v55, %v1266_v50 }
 0x694   :  { %1581 = vmatmul.mubr.msk.f32.vlgmr.msra.gmra.mxu1 %vm1285_vm2, %v1275_v56 }
 0x754   :  { %v1355_v57 = vpop.f32.mrf.mxu1 }
 0x755   :  { %v1356_v58 = vadd.f32 %v1418_v35, %v1355_v57 }
 0x756   :  { %v1582_v59 = vpop.f32.mrf.mxu1 }
 0x757   :  { %v1420_v60 = vmul.f32 -1.442695, %v1356_v58 }
 0x759   :  { %1638 = vpow2.f32 %v1420_v60 }
 0x766   :  { %v1639_v61 = vpop.eup %1638 }
 0x767   :  { %v1362_v62 = vadd.f32 1.0, %v1639_v61 }
 0x769   :  { %1640 = vrcp.f32 %v1362_v62 }
 0x776   :  { %v1641_v63 = vpop.eup %1640 }
 0x777   :  { %v1365_v1 = vmul.f32 %v1641_v63, %v1356_v58 }
 0x779   :  { %v1373_v2 = vmul.f32 %v1421_v0, %v1365_v1 }
 0x77b   :  { %v1375_v11 = vsel %vm1374_vm3, %v1373_v2, 0.0 }
 0x77c   :  { %1376 = vadd.xlane.f32.xlu0 %v1375_v11 }
 0x805   :  { %v1377_v14 = vpop.xlane.xlu0 %1376 }
 0x806   :  { %v1385_v3 = vadd.f32 %v1422_v12, %v1377_v14 }
 0x808   :  { %1387 = vst.msk [vmem:[%s2334_s20] sm:$0xf] %vm1386_vm4, %v1385_v3 }
 0x809   :  { %1392 = vsyncpa [#allocation4], 1 }
 0x80a   :  { %1393 = vsyncpa [#allocation6], 1 }
 0x80b   :  { %1394 = vsyncpa [#allocation9], 1 }
 0x80c   :  { %1395 = vsyncpa [#allocation12], 1 }
 0x80d   :  { %1396 = vsyncpa [#allocation15], 1 }
 0x80e   :  { %1397 = vsyncpa [#allocation18], 1 }

</bundles_post_ra>
